<compile_context>
chip_gen: v6e
topology: v6e:2x2x1
jax: 0.10.0
libtpu: 0.0.40
codegen_flags: <defaults>
</compile_context>

<pallas_src>
import functools

import jax
import jax.numpy as jnp
from jax.experimental import pallas as pl
from jax.experimental.pallas import tpu as pltpu

LANE = 128


def _round_up(x, m):
    return (x + m - 1) // m * m


def _vmem_capacity_bytes():
    try:
        return int(pltpu.get_tpu_info().vmem_capacity_bytes)
    except Exception:
        return 64 << 20            # conservative (v7x) if the query is unavailable


# ----------------------------------------------------------------------------
# Kernel 1: fused 3x3-conv stem (as a single im2col matmul) + SiLU + global avg pool
#   xcol_ref   : (1, slab, Kp)  bf16  im2col rows for one batch elem / one row slab
#   w_ref      : (Kp, Fp)       bf16  conv taps folded into K (resident)
#   b_ref      : (1, Fp)        f32   conv bias (resident)
#   o_ref      : (1, 1, Fp)     f32   pooled feature row (AdaptiveAvgPool2d(1))
#   pooled_sum : (1, Fp)        f32   running pooled sum (VMEM scratch)
# ----------------------------------------------------------------------------
def conv_silu_pool_kernel(xcol_ref, w_ref, b_ref, o_ref, pooled_sum, *, hw, slab):
    si = pl.program_id(1)

    @pl.when(si == 0)
    def _():
        pooled_sum[...] = jnp.zeros_like(pooled_sum)

    # Single K=128 MXU pass over this row slab (all 9 conv taps folded into K).
    acc = jnp.dot(xcol_ref[0], w_ref[...], preferred_element_type=jnp.float32)
    acc = acc + b_ref[...]
    act = acc * jax.nn.sigmoid(acc)                       # SiLU, f32 (v5e-safe)

    if hw % slab != 0:                                    # static: mask zero-padded rows
        rows = si * slab + jax.lax.broadcasted_iota(jnp.int32, act.shape, 0)
        act = jnp.where(rows < hw, act, 0.0)

    pooled_sum[...] += jnp.sum(act, axis=0, keepdims=True)

    @pl.when(si == pl.num_programs(1) - 1)
    def _():
        o_ref[0] = (pooled_sum[...] * (1.0 / hw)).astype(o_ref.dtype)


def conv_stem_pool(x_col, w, b, *, hw, slab, vmem_limit):
    B, m_pad, Kp = x_col.shape
    Fp = w.shape[-1]
    n_slabs = m_pad // slab

    flops = 2 * B * m_pad * Kp * Fp
    transcendentals = B * m_pad * Fp                      # sigmoid in SiLU
    bytes_accessed = (B * m_pad * Kp * 2                  # bf16 im2col input
                      + Kp * Fp * 2                       # bf16 conv weight
                      + Fp * 4                            # f32 bias
                      + B * Fp * 4)                       # f32 pooled output

    kernel = functools.partial(conv_silu_pool_kernel, hw=hw, slab=slab)
    return pl.pallas_call(
        kernel,
        out_shape=jax.ShapeDtypeStruct((B, 1, Fp), jnp.float32),
        grid=(B, n_slabs),
        in_specs=[
            pl.BlockSpec((1, slab, Kp), lambda bi, si: (bi, si, 0)),
            pl.BlockSpec((Kp, Fp), lambda bi, si: (0, 0)),       # resident weight
            pl.BlockSpec((1, Fp), lambda bi, si: (0, 0)),        # resident bias
        ],
        out_specs=pl.BlockSpec((1, 1, Fp), lambda bi, si: (bi, 0, 0)),
        scratch_shapes=[pltpu.VMEM((1, Fp), jnp.float32)],       # running pooled sum
        compiler_params=pltpu.CompilerParams(
            dimension_semantics=("parallel", "arbitrary"),
            vmem_limit_bytes=vmem_limit),
        cost_estimate=pl.CostEstimate(
            flops=flops, transcendentals=transcendentals,
            bytes_accessed=bytes_accessed),
    )(x_col, w, b)


# ----------------------------------------------------------------------------
# Kernel 2: final nn.Linear classifier (softmax loss_module), >=512-wide class tiles
#   f_ref : (B, Fp)   f32   pooled features (resident across class tiles)
#   w_ref : (Fp, tn)  bf16  classifier weight tile (streamed)
#   b_ref : (1, tn)   f32   classifier bias tile
#   o_ref : (B, tn)   f32   logits tile (lane-dense store)
# ----------------------------------------------------------------------------
def head_kernel(f_ref, w_ref, b_ref, o_ref):
    o_ref[...] = jnp.dot(f_ref[...].astype(jnp.bfloat16), w_ref[...],
                         preferred_element_type=jnp.float32) + b_ref[...]


def classifier_head(feat, w, b, *, tn, vmem_limit):
    B, Fp = feat.shape
    Np = w.shape[1]

    flops = 2 * B * Fp * Np
    bytes_accessed = B * Fp * 4 + Fp * Np * 2 + Np * 4 + B * Np * 4

    return pl.pallas_call(
        head_kernel,
        out_shape=jax.ShapeDtypeStruct((B, Np), jnp.float32),
        grid=(Np // tn,),
        in_specs=[
            pl.BlockSpec((B, Fp), lambda j: (0, 0)),             # resident features
            pl.BlockSpec((Fp, tn), lambda j: (0, j)),            # streamed weight tiles
            pl.BlockSpec((1, tn), lambda j: (0, j)),
        ],
        out_specs=pl.BlockSpec((B, tn), lambda j: (0, j)),       # lane-dense stores
        compiler_params=pltpu.CompilerParams(
            dimension_semantics=("parallel",),
            vmem_limit_bytes=vmem_limit),
        cost_estimate=pl.CostEstimate(
            flops=flops, transcendentals=0, bytes_accessed=bytes_accessed),
    )(feat, w, b)


# ----------------------------------------------------------------------------
# Model wrapper (layout plumbing in JAX, compute in Pallas)
# ----------------------------------------------------------------------------
class ShopeeImageModelPallas:
    def __init__(self, n_classes, c_in, c_feat, key):
        k1, k2, k3, k4 = jax.random.split(key, 4)
        self.c_in = c_in
        self.c_feat = c_feat
        self.n_classes = n_classes
        self.k_p = _round_up(9 * c_in, LANE)        # im2col K (9 taps folded in), lane-dense
        self.c_feat_p = _round_up(c_feat, LANE)     # lane-dense feature dim
        self.n_cls_p = _round_up(n_classes, 512)    # >=512-wide class tiles

        # synthetic backbone stem: 3x3 conv (+ SiLU), deterministic weights
        conv_w = 0.05 * jax.random.normal(k1, (3, 3, c_in, c_feat), jnp.float32)
        conv_b = 0.01 * jax.random.normal(k2, (1, c_feat), jnp.float32)
        # final = nn.Linear(final_in_features, n_classes), stored as [in, out]
        head_w = 0.05 * jax.random.normal(k3, (c_feat, n_classes), jnp.float32)
        head_b = 0.01 * jax.random.normal(k4, (1, n_classes), jnp.float32)

        # conv weight folded to im2col layout (row order = (dy, dx, c), matching the wrapper)
        w_col = jnp.zeros((self.k_p, self.c_feat_p), jnp.float32)
        w_col = w_col.at[:9 * c_in, :c_feat].set(conv_w.reshape(9 * c_in, c_feat))
        self.conv_w = w_col.astype(jnp.bfloat16)
        self.conv_b = (jnp.zeros((1, self.c_feat_p), jnp.float32)
                       .at[:, :c_feat].set(conv_b))

        hmat = jnp.zeros((self.c_feat_p, self.n_cls_p), jnp.float32)
        self.head_w = hmat.at[:c_feat, :n_classes].set(head_w).astype(jnp.bfloat16)
        self.head_b = (jnp.zeros((1, self.n_cls_p), jnp.float32)
                       .at[:, :n_classes].set(head_b))

    @staticmethod
    def _pick_slab(hw, fp):
        # Rows per grid step: multiple of 8, capped so the (slab, Fp) f32 activation
        # working set stays small and independent of image size.
        slab = min(_round_up(hw, 8), 512)
        max_rows = max(8, (8 << 20) // (fp * 4))
        slab = min(slab, (max_rows // 8) * 8)
        return max(slab, 8)

    def __call__(self, x, label=None):              # label unused: loss_module='softmax'
        B, C, H, W = x.shape
        assert C == self.c_in
        hw = H * W
        Kp, Fp = self.k_p, self.c_feat_p

        # NCHW -> NHWC, 1-pixel zero halo (3x3 'same' conv), im2col to (B, H*W, 9*C),
        # zero-pad the minor dim to 128 so kernel 1 reads lane-dense full vregs.
        xh = jnp.transpose(x, (0, 2, 3, 1))
        xh = jnp.pad(xh, ((0, 0), (1, 1), (1, 1), (0, 0)))
        cols = [xh[:, dy:dy + H, dx:dx + W, :] for dy in range(3) for dx in range(3)]
        x_col = jnp.concatenate(cols, axis=-1).reshape(B, hw, 9 * C)

        slab = self._pick_slab(hw, Fp)
        m_pad = _round_up(hw, slab)
        x_col = jnp.pad(x_col, ((0, 0), (0, m_pad - hw), (0, Kp - 9 * C)))
        x_col = x_col.astype(jnp.bfloat16)

        # Generation-aware VMEM budgets (128 MiB v5e/v6e, 64 MiB v7x), sized from blocks.
        cap_lim = (_vmem_capacity_bytes() * 3) // 4
        conv_bytes = (2 * slab * Kp * 2             # double-buffered im2col slab
                      + Kp * Fp * 2 + Fp * 4        # resident weight + bias
                      + 2 * Fp * 4 + Fp * 4         # output block + pooled-sum scratch
                      + 2 * slab * Fp * 4)          # activation working-set headroom
        conv_vmem = int(min(cap_lim, max(8 << 20, 2 * conv_bytes)))

        pooled = conv_stem_pool(x_col, self.conv_w, self.conv_b,
                                hw=hw, slab=slab, vmem_limit=conv_vmem)   # (B,1,Fp) f32
        feat = pooled.reshape(B, Fp)                # pooled features kept f32

        tn = 1024 if self.n_cls_p % 1024 == 0 else 512
        head_bytes = 2 * (B * Fp * 4 + Fp * tn * 2 + tn * 4 + B * tn * 4)
        head_vmem = int(min(cap_lim, max(8 << 20, 2 * head_bytes)))

        logits = classifier_head(feat, self.head_w, self.head_b,
                                 tn=tn, vmem_limit=head_vmem)             # (B, n_cls_p) f32
        return logits[:, :self.n_classes]


if __name__ == "__main__":
    key = jax.random.PRNGKey(0)
    kx, kl, kp = jax.random.split(key, 3)

    B, C_in, H, W = 2, 4, 16, 16
    C_feat = 32            # stands in for backbone final_in_features
    n_classes = 24

    x = jax.random.normal(kx, (B, C_in, H, W), dtype=jnp.float32)
    label = jax.random.randint(kl, (B,), 0, n_classes)    # unused (softmax head)

    model = ShopeeImageModelPallas(n_classes, C_in, C_feat, kp)
    logits = model(x, label)
    logits = jax.block_until_ready(logits)
    assert logits.shape == (B, n_classes) and logits.dtype == jnp.float32
    print("KERNEL_OK")
</pallas_src>

<mosaic_0001>
module attributes {stable_mosaic.version = 11 : i64} {
  func.func @conv_silu_pool_kernel(%arg0: i32, %arg1: i32, %arg2: memref<1x256x128xbf16, #tpu.memory_space<vmem>>, %arg3: memref<128x128xbf16, #tpu.memory_space<vmem>>, %arg4: memref<1x128xf32, #tpu.memory_space<vmem>>, %arg5: memref<1x1x128xf32, #tpu.memory_space<vmem>>, %arg6: memref<1x128xf32, #tpu.memory_space<vmem>>) attributes {dimension_semantics = [#tpu.dimension_semantics<parallel>, #tpu.dimension_semantics<arbitrary>], iteration_bounds = array<i64: 2, 1>, scalar_prefetch = 0 : i64, scratch_operands = 1 : i64, tpu.core_type = #tpu.core_type<tc>, window_params = [{transform_indices = @transform_0, window_bounds = array<i64: 1, 256, 128>}, {pipeline_mode = #tpu.pipeline_mode<synchronous>, transform_indices = @transform_1, window_bounds = array<i64: 128, 128>}, {pipeline_mode = #tpu.pipeline_mode<synchronous>, transform_indices = @transform_2, window_bounds = array<i64: 1, 128>}, {transform_indices = @transform_3, window_bounds = array<i64: 1, 1, 128>}]} {
    %c0_i32 = arith.constant 0 : i32
    %0 = arith.cmpi eq, %arg1, %c0_i32 : i32
    %1 = arith.extui %0 : i1 to i32
    %c0_i32_0 = arith.constant 0 : i32
    %2 = arith.cmpi ne, %1, %c0_i32_0 : i32
    scf.if %2 {
      %cst_15 = arith.constant 0.000000e+00 : f32
      %24 = vector.broadcast %cst_15 : f32 to vector<1x128xf32>
      %c0_16 = arith.constant 0 : index
      %c0_17 = arith.constant 0 : index
      %25 = vector.load %arg6[%c0_16, %c0_17] : memref<1x128xf32, #tpu.memory_space<vmem>>, vector<1x128xf32>
      tpu.vector_store %arg6[%c0_16, %c0_17], %24 {strides = array<i32>} : memref<1x128xf32, #tpu.memory_space<vmem>>, vector<1x128xf32>,
    } else {
    }
    %c0 = arith.constant 0 : index
    %c0_1 = arith.constant 0 : index
    %c0_2 = arith.constant 0 : index
    %3 = vector.load %arg2[%c0, %c0_1, %c0_2] : memref<1x256x128xbf16, #tpu.memory_space<vmem>>, vector<1x256x128xbf16>
    %4 = vector.shape_cast %3 : vector<1x256x128xbf16> to vector<256x128xbf16>
    %c0_3 = arith.constant 0 : index
    %c0_4 = arith.constant 0 : index
    %5 = vector.load %arg3[%c0_3, %c0_4] : memref<128x128xbf16, #tpu.memory_space<vmem>>, vector<128x128xbf16>
    %cst = arith.constant dense<0.000000e+00> : vector<256x128xf32>
    %6 = tpu.matmul %4, %5, %cst {dimension_numbers = #tpu.dot_dimension_numbers<[1], [0], [0], [1], [0, 0, 1, 1], [], []>} : vector<256x128xbf16>, vector<128x128xbf16>, vector<256x128xf32> -> vector<256x128xf32>
    %c0_5 = arith.constant 0 : index
    %c0_6 = arith.constant 0 : index
    %7 = vector.load %arg4[%c0_5, %c0_6] : memref<1x128xf32, #tpu.memory_space<vmem>>, vector<1x128xf32>
    %8 = vector.broadcast %7 : vector<1x128xf32> to vector<256x128xf32>
    %9 = arith.addf %6, %8 : vector<256x128xf32>
    %10 = arith.negf %9 : vector<256x128xf32>
    %11 = math.exp %10 : vector<256x128xf32>
    %cst_7 = arith.constant 1.000000e+00 : f32
    %12 = vector.broadcast %cst_7 : f32 to vector<256x128xf32>
    %13 = arith.addf %12, %11 : vector<256x128xf32>
    %14 = arith.divf %12, %13 : vector<256x128xf32>
    %15 = arith.mulf %9, %14 : vector<256x128xf32>
    %c0_8 = arith.constant 0 : index
    %c0_9 = arith.constant 0 : index
    %16 = vector.load %arg6[%c0_8, %c0_9] : memref<1x128xf32, #tpu.memory_space<vmem>>, vector<1x128xf32>
    %cst_10 = arith.constant dense<0.000000e+00> : vector<128xf32>
    %17 = vector.multi_reduction <add>, %15, %cst_10 [0] : vector<256x128xf32> to vector<128xf32>
    %18 = vector.shape_cast %17 : vector<128xf32> to vector<1x128xf32>
    %19 = arith.addf %16, %18 : vector<1x128xf32>
    %c0_11 = arith.constant 0 : index
    %c0_12 = arith.constant 0 : index
    %20 = vector.load %arg6[%c0_11, %c0_12] : memref<1x128xf32, #tpu.memory_space<vmem>>, vector<1x128xf32>
    tpu.vector_store %arg6[%c0_11, %c0_12], %19 {strides = array<i32>} : memref<1x128xf32, #tpu.memory_space<vmem>>, vector<1x128xf32>,
    %c0_i32_13 = arith.constant 0 : i32
    %21 = arith.cmpi eq, %arg1, %c0_i32_13 : i32
    %22 = arith.extui %21 : i1 to i32
    %c0_i32_14 = arith.constant 0 : i32
    %23 = arith.cmpi ne, %22, %c0_i32_14 : i32
    scf.if %23 {
      %c0_15 = arith.constant 0 : index
      %c0_16 = arith.constant 0 : index
      %24 = vector.load %arg6[%c0_15, %c0_16] : memref<1x128xf32, #tpu.memory_space<vmem>>, vector<1x128xf32>
      %cst_17 = arith.constant 3.906250e-03 : f32
      %25 = vector.broadcast %cst_17 : f32 to vector<1x128xf32>
      %26 = arith.mulf %24, %25 : vector<1x128xf32>
      %c0_18 = arith.constant 0 : index
      %c0_19 = arith.constant 0 : index
      %c0_20 = arith.constant 0 : index
      %27 = vector.load %arg5[%c0_18, %c0_19, %c0_20] : memref<1x1x128xf32, #tpu.memory_space<vmem>>, vector<1x1x128xf32>
      %28 = vector.shape_cast %27 : vector<1x1x128xf32> to vector<1x128xf32>
      %29 = vector.shape_cast %26 : vector<1x128xf32> to vector<1x1x128xf32>
      tpu.vector_store %arg5[%c0_18, %c0_19, %c0_20], %29 {strides = array<i32>} : memref<1x1x128xf32, #tpu.memory_space<vmem>>, vector<1x1x128xf32>,
    } else {
    }
    return
  }
  func.func @transform_0(%arg0: i32, %arg1: i32) -> (i32, i32, i32) {
    %c0_i32 = arith.constant 0 : i32
    %c0_i32_0 = arith.constant 0 : i32
    return %arg0, %arg1, %c0_i32 : i32, i32, i32
  }
  func.func @transform_1(%arg0: i32, %arg1: i32) -> (i32, i32) {
    %c0_i32 = arith.constant 0 : i32
    %c0_i32_0 = arith.constant 0 : i32
    %c0_i32_1 = arith.constant 0 : i32
    return %c0_i32, %c0_i32_0 : i32, i32
  }
  func.func @transform_2(%arg0: i32, %arg1: i32) -> (i32, i32) {
    %c0_i32 = arith.constant 0 : i32
    %c0_i32_0 = arith.constant 0 : i32
    %c0_i32_1 = arith.constant 0 : i32
    return %c0_i32, %c0_i32_0 : i32, i32
  }
  func.func @transform_3(%arg0: i32, %arg1: i32) -> (i32, i32, i32) {
    %c0_i32 = arith.constant 0 : i32
    %c0_i32_0 = arith.constant 0 : i32
    %c0_i32_1 = arith.constant 0 : i32
    return %arg0, %c0_i32, %c0_i32_0 : i32, i32, i32
  }
}

</mosaic_0001>

<bundles_post_ra>
// kernel: tpu_custom_call.1
= control target key start
LH: loop header
LB: loop body
LE: loop exit
PB: predicated region body
PF: predicated region fallthrough
CT: control target
= control target key end

     0   :  { %8 = vsyncpa [#allocation4], 0  ;;  %s1897_s0 = inlined_call_operand.hbm [shape: bf16[2,256,128], index: 0, kind: input, shape index: {}]   ;;  %s1898_s1 = inlined_call_operand.hbm [shape: bf16[128,128], index: 1, kind: input, shape index: {}]   ;;  %s1899_s2 = inlined_call_operand.vmem [shape: f32[1,128], index: 2, kind: input, shape index: {}]   ;;  %s1900_s3 = inlined_call_operand.hbm [shape: f32[2,1,128], index: 3, kind: output, shape index: {}]  }
   0x1   :  { %10 = vsyncpa [#allocation4 + $0x1], 0 }
   0x2   :  { %11 = vsyncpa [#allocation7], 0 }
   0x3   :  { %12 = vsyncpa [#allocation5], 0 }
   0x4   :  { %14 = vsyncpa [#allocation5 + $0x1], 0  ;;  %s1510_s12 = smov 0   ;;  %s1512_s13 = smov 0  }
   0x5   :  { %s1514_s14 = smov 0   ;;  %s1516_s15 = smov 0  }
   0x6   :  { %s1518_s16 = smov 0   ;;  %s1520_s17 = smov 0  }
   0x7 LB: > { %s956_s18 = sadd.s32 4294967295, %s1482_s17   ;;  %s957_s19 = sadd.s32 4294967294, %s1482_s17   ;;  %s1482_s17 = sphi %s1520_s17, %s20_s17   ;;  %s1478_s16 = sphi %s1518_s16, %s1922_s16   ;;  %s1474_s15 = sphi %s1516_s15, %s1921_s15   ;;  %s1470_s14 = sphi %s1514_s14, %s1920_s14   ;;  %s1466_s13 = sphi %s1512_s13, %s1919_s13   ;;  %s1462_s12 = sphi %s1510_s12, %s1918_s12  }
   0x8   : > { %p54_p0 = scmp.ne.s32.totalorder %s1466_s13, %s1462_s12  ;;  %p1544_p1 = scmp.eq.s32.totalorder %s956_s18, 0 }
   0x9   : > { %p1548_p2 = scmp.eq.s32.totalorder %s956_s18, 1  ;;  %p126_p3 = scmp.eq.s32.totalorder %s957_s19, 1 }
   0xa   : > { %p1554_p4 = por %p1544_p1, %p54_p0  ;;  %p958_p5 = scmp.ge.s32.totalorder %s1482_s17, 1 }
   0xb   : > { %p1559_p6 = por %p126_p3, %p54_p0  ;;  %p133_p7 = scmp.lt.s32.totalorder %s1482_s17, 3 }
   0xc   : > { %s1906_s22 = scalar_select %p1554_p4, 1, 0 }
   0xd   : > { %s1907_s23 = scalar_select %p1559_p6, 1, 0 }
   0xe   : > { %p1564_p8 = pnand %p958_p5, %p133_p7  ;;  %s1484_s25 = smov [#allocation6]  }
   0xf   : > { %s145_s26 = sshll.u32 %s1484_s25, 4  ;;  %s32_s28 = sadd.s32 1, %s1478_s16  ;;  %s146_s26 = int_to_ptr.vmem [resolvable:$true] %s145_s26 }
  0x10   : > { %p1124_p9 = pneg %p1564_p8  ;;  %s1355_s29 = scalar_lea.vmem %s146_s26, 1024 }
  0x11   : > { %p1356_p13 = scmp.ne.s32.totalorder %s146_s26, %s1355_s29  ;;  %p1363_p5 = scmp.lt.s32.totalorder %s146_s26, %s146_s26 }
  0x12   : > { %p1573_p11 = pnand %p1124_p9, %p1544_p1  ;;  %p1364_p7 = scmp.lt.s32.totalorder %s1355_s29, %s1355_s29 }
  0x14   : > { %p1346_p12 = pneg %p1573_p11  ;;  %p1365_p6 = por %p1364_p7, %p1363_p5 }
  0x16   : > { %p1358_p0 = pnand %p1356_p13, %p1346_p12 }
  0x18   : > { %p1359_p3 = pneg %p1358_p0 }
  0x1a   : > { %p1366_p4 = pnand %p1365_p6, %p1359_p3 }
  0x1c   : > { %1369 = shalt.err (!%p1366_p4)
}
  0x1d   : > { %s1902_s30 = smov 64   ;;  %s1903_s4 = smov 4  }
  0x1e   : > { %1127 = dma.hbm_to_vmem [thread:$0]  (!%p1573_p11), %s1898_s1, 1024, %s146_s26, [#allocation7], %s1902_s30, %s1902_s30, %s1903_s4  }
  0x1f   : > { %p34_p4 = scmp.ge.s32.totalorder %s32_s28, 2  ;;  %s41_s7 = sadd.s32 1, %s1470_s14 }
  0x20   : > { %p48_p6 = scmp.ne.s32.totalorder %s1470_s14, %s1466_s13  ;;  %p49_p9 = scmp.eq.s32.totalorder %s1482_s17, 0 }
  0x21   : > { %s1924_s28 = smov (%p34_p4, %s32_s28), 0  ;;  %p1137_p0 = scmp.lt.s32.totalorder %s1482_s17, 2 }
  0x22   : > { %p1594_p12 = por %p49_p9, %p48_p6  ;;  %p1600_p13 = por %p1548_p2, %p48_p6 }
  0x23   : > { %s36_s10 = ssub.s32 %s1478_s16, %s1924_s28  ;;  %s162_s11 = sand.u32 1, %s1470_s14  }
  0x24   : > { %p39_p11 = scmp.eq.s32.totalorder %s36_s10, 0  ;;  %s961_s18 = sshll.u32 %s162_s11, 7 }
  0x25   : > { %s1027_s25 = sshll.u32 %s1478_s16, 11  ;;  %s166_s5 = scalar_lea.vmem [#allocation3], %s961_s18 }
  0x26   : > { %s1609_s19 = scalar_select %p39_p11, %s1470_s14, %s41_s7  }
  0x27   : > { %s174_s29 = scalar_lea.hbm %s1897_s0, %s1027_s25  ;;  %s175_s6 = sshll.u32 %s166_s5, 4  ;;  %s176_s6 = int_to_ptr.vmem [resolvable:$true] %s175_s6 }
  0x28   : > { %p1617_p2 = pnand %p1137_p0, %p1594_p12  ;;  %s163_s30 = scalar_lea.sflag [#allocation4], %s162_s11 }
  0x29   : > { %s1383_s10 = scalar_lea.vmem %s176_s6, 2048  ;;  %s1487_s7 = smov [#allocation3]  }
  0x2a   : > { %p1372_p3 = pneg %p1617_p2  ;;  %p1384_p5 = scmp.ne.s32.totalorder %s176_s6, %s1383_s10 }
  0x2b   : > { %s1388_s4 = sshll.u32 %s1487_s7, 4  ;;  %s1389_s4 = int_to_ptr.vmem [resolvable:$false] %s1388_s4 }
  0x2c   : > { %p1386_p7 = pnand %p1384_p5, %p1372_p3  ;;  %s1390_s25 = scalar_lea.vmem %s1389_s4, 4096 }
  0x2d   : > { %p1391_p6 = scmp.lt.s32.totalorder %s176_s6, %s1389_s4  ;;  %p1392_p9 = scmp.lt.s32.totalorder %s1390_s25, %s1383_s10 }
  0x2e   : > { %p1387_p4 = pneg %p1386_p7 }
  0x2f   : > { %p1393_p11 = por %p1392_p9, %p1391_p6 }
  0x31   : > { %p1394_p10 = pnand %p1393_p11, %p1387_p4 }
  0x33   : > { %1397 = shalt.err (!%p1394_p10)
}
  0x34   : > { %s1913_s8 = smov 4   ;;  %s1914_s18 = smov 64  }
  0x35   : > { %1131 = dma.hbm_to_vmem [thread:$0]  (!%p1617_p2), %s174_s29, 2048, %s176_s6, %s163_s30, %s1914_s18, %s1914_s18, %s1913_s8  }
  0x36   : > { %187 = sbr.rel (%p1564_p8) target bundleno = 443 (0x1bb), region = 32  ;;  %s1631_s11 = sand.u32 (!%p1564_p8), 1, %s1466_s13  }
  0x37   : > { %s965_s4 = sshll.u32 (!%p1564_p8), %s1631_s11, 7  ;;  %s190_s26 = scalar_lea.sflag (!%p1564_p8), [#allocation4], %s1631_s11 }
  0x38   : > { %s1635_s27 = scalar_lea.vmem (!%p1564_p8), [#allocation3], %s965_s4  ;;  %p1915_p10 = scmp.ne.s32.totalorder (!%p1564_p8), %s1906_s22, 0 }
  0x3b   : > { %1449 = dma.done.wait (%p1915_p10), %s190_s26, 2048  }
  0x3c   : > { %1451 = vsyncadd (%p1915_p10), %s190_s26, 4294965248 }
  0x3d   : > { %1453 = dma.done.wait (%p1544_p1), [#allocation7], 1024  }
  0x3e   : > { %1455 = vsyncadd (%p1544_p1), [#allocation7], 4294966272  ;;  %v1192_v0 = vld [vmem:[#allocation6 + $0x38] sm:$0xff]   ;;  %v1193_v1 = vld [vmem:[#allocation6 + $0x30] sm:$0xff]   ;;  %v1488_v24 = vmov 0.0   ;;  %s1024_s24 = sshll.u32 %s1474_s15, 4 }
  0x3f   : > { %1052 = vmatprep.subr.bf16.mxu0 %v1192_v0  ;;  %1100 = vmatprep.subr.bf16.mxu1 %v1192_v0  ;;  %v1194_v2 = vld [vmem:[#allocation6 + $0x28] sm:$0xff]   ;;  %v1195_v3 = vld [vmem:[#allocation6 + $0x20] sm:$0xff]   ;;  %v1196_v6 = vld [vmem:[#allocation6 + $0x18] sm:$0xff]   ;;  %225 = vst [vmem:[#allocation2] sm:$0x1] %v1488_v24  ;;  %s218_s30 = scalar_lea.vmem [#allocation8], %s1631_s11  ;;  %s867_s21 = scalar_lea.hbm %s1900_s3, %s1024_s24 }
  0x40   : > { %1053 = vmatpush3.bf16.msra.mxu0 %v1192_v0  ;;  %1108 = vmatpush3.bf16.msra.mxu1 %v1192_v0  ;;  %v1200_v4 = vld [vmem:[%s1635_s27] sm:$0xff]   ;;  %v1197_v7 = vld [vmem:[#allocation6 + $0x10] sm:$0xff]   ;;  %v1198_v8 = vld [vmem:[#allocation6 + $0x8] sm:$0xff]   ;;  %s869_s29 = sshll.u32 %s218_s30, 4  ;;  %s857_s10 = scalar_lea.sflag [#allocation5], %s1631_s11  ;;  %s870_s29 = int_to_ptr.vmem [resolvable:$true] %s869_s29 }
  0x41   : > { %1054 = vmatprep.subr.bf16.mxu0 %v1193_v1  ;;  %1101 = vmatprep.subr.bf16.mxu1 %v1193_v1  ;;  %v1201_v5 = vld [vmem:[%s1635_s27 + $0x40] sm:$0xff]   ;;  %v1202_v10 = vld [vmem:[%s1635_s27 + $0x8] sm:$0xff]   ;;  %v1204_v12 = vld [vmem:[%s1635_s27 + $0x10] sm:$0xff]   ;;  %s1398_s7 = scalar_lea.vmem %s870_s29, 16  ;;  %s1489_s25 = smov [#allocation8]  }
  0x42   : > { %1068 = vmatprep.mubr.bf16.mxu0 %v1200_v4  ;;  %1084 = vmatprep.mubr.bf16.mxu1 %v1201_v5  ;;  %v1199_v9 = vld [vmem:[#allocation6] sm:$0xff]   ;;  %v1203_v11 = vld [vmem:[%s1635_s27 + $0x48] sm:$0xff]   ;;  %v1205_v13 = vld [vmem:[%s1635_s27 + $0x50] sm:$0xff]   ;;  %p1399_p1 = scmp.ne.s32.totalorder %s870_s29, %s1398_s7  ;;  %s1402_s8 = sshll.u32 %s1489_s25, 4  ;;  %s1403_s8 = int_to_ptr.vmem [resolvable:$false] %s1402_s8 }
  0x43   : > { %v1206_v14 = vld [vmem:[%s1635_s27 + $0x18] sm:$0xff]   ;;  %v1208_v16 = vld [vmem:[%s1635_s27 + $0x20] sm:$0xff]   ;;  %v1210_v18 = vld [vmem:[%s1635_s27 + $0x28] sm:$0xff]   ;;  %s1404_s15 = scalar_lea.vmem %s1403_s8, 32  ;;  %p1405_p0 = scmp.lt.s32.totalorder %s870_s29, %s1403_s8 }
  0x44   : > { %1055 = vmatpush3.bf16.msra.mxu0 %v1193_v1  ;;  %1109 = vmatpush3.bf16.msra.mxu1 %v1193_v1  ;;  %v1207_v15 = vld [vmem:[%s1635_s27 + $0x58] sm:$0xff]   ;;  %v1209_v17 = vld [vmem:[%s1635_s27 + $0x60] sm:$0xff]   ;;  %v1211_v19 = vld [vmem:[%s1635_s27 + $0x68] sm:$0xff]   ;;  %p1400_p8 = pnand %p1399_p1, %p1600_p13  ;;  %p1406_p2 = scmp.lt.s32.totalorder %s1404_s15, %s1398_s7 }
  0x45   : > { %1056 = vmatprep.subr.bf16.mxu0 %v1194_v2  ;;  %1102 = vmatprep.subr.bf16.mxu1 %v1194_v2  ;;  %v1212_v20 = vld [vmem:[%s1635_s27 + $0x30] sm:$0xff]   ;;  %v1214_v22 = vld [vmem:[%s1635_s27 + $0x38] sm:$0xff]  }
  0x46   : > { %v1213_v21 = vld [vmem:[%s1635_s27 + $0x70] sm:$0xff]   ;;  %v1215_v23 = vld [vmem:[%s1635_s27 + $0x78] sm:$0xff]   ;;  %p1401_p12 = pneg %p1400_p8  ;;  %p1407_p3 = por %p1406_p2, %p1405_p0 }
  0x47   : > { %v1664_v25 = vld [vmem:[%s1899_s2] ss:$0 sm:$0xff] }
  0x48   : > { %1057 = vmatpush3.bf16.msra.mxu0 %v1194_v2  ;;  %1110 = vmatpush3.bf16.msra.mxu1 %v1194_v2  ;;  %p1408_p5 = pnand %p1407_p3, %p1401_p12 }
  0x49   : > { %1058 = vmatprep.subr.bf16.mxu0 %v1195_v3  ;;  %1103 = vmatprep.subr.bf16.mxu1 %v1195_v3 }
  0x4c   : > { %1059 = vmatpush3.bf16.msra.mxu0 %v1195_v3  ;;  %1111 = vmatpush3.bf16.msra.mxu1 %v1195_v3 }
  0x4d   : > { %1060 = vmatprep.subr.bf16.mxu0 %v1196_v6  ;;  %1104 = vmatprep.subr.bf16.mxu1 %v1196_v6 }
  0x50   : > { %1061 = vmatpush3.bf16.msra.mxu0 %v1196_v6  ;;  %1112 = vmatpush3.bf16.msra.mxu1 %v1196_v6 }
  0x51   : > { %1062 = vmatprep.subr.bf16.mxu0 %v1197_v7  ;;  %1105 = vmatprep.subr.bf16.mxu1 %v1197_v7 }
  0x54   : > { %1063 = vmatpush3.bf16.msra.mxu0 %v1197_v7  ;;  %1113 = vmatpush3.bf16.msra.mxu1 %v1197_v7 }
  0x55   : > { %1064 = vmatprep.subr.bf16.mxu0 %v1198_v8  ;;  %1106 = vmatprep.subr.bf16.mxu1 %v1198_v8 }
  0x58   : > { %1065 = vmatpush3.bf16.msra.mxu0 %v1198_v8  ;;  %1114 = vmatpush3.bf16.msra.mxu1 %v1198_v8 }
  0x59   : > { %1066 = vmatprep.subr.bf16.mxu0 %v1199_v9  ;;  %1107 = vmatprep.subr.bf16.mxu1 %v1199_v9 }
  0x5c   : > { %1067 = vmatpush3.bf16.msra.mxu0 %v1199_v9  ;;  %1115 = vmatpush3.bf16.msra.mxu1 %v1199_v9 }
  0x5f   : > { %1069 = vmatmul.mubr.bf16.vlgmr.msra.gmra.mxu0 %v1202_v10  ;;  %1085 = vmatmul.mubr.bf16.vlgmr.msra.gmra.mxu1 %v1203_v11 }
  0x60   : > { %1072 = vmatprep.mubr.bf16.mxu0 %v1204_v12  ;;  %1088 = vmatprep.mubr.bf16.mxu1 %v1205_v13 }
  0x67   : > { %1073 = vmatmul.mubr.bf16.gmra.mxu0 %v1206_v14  ;;  %1089 = vmatmul.mubr.bf16.gmra.mxu1 %v1207_v15 }
  0x68   : > { %1076 = vmatprep.mubr.bf16.mxu0 %v1208_v16  ;;  %1092 = vmatprep.mubr.bf16.mxu1 %v1209_v17 }
  0x6f   : > { %1077 = vmatmul.mubr.bf16.gmra.mxu0 %v1210_v18  ;;  %1093 = vmatmul.mubr.bf16.gmra.mxu1 %v1211_v19 }
  0x70   : > { %1080 = vmatprep.mubr.bf16.mxu0 %v1212_v20  ;;  %1096 = vmatprep.mubr.bf16.mxu1 %v1213_v21 }
  0x77   : > { %1081 = vmatmul.mubr.bf16.gmra.mxu0 %v1214_v22  ;;  %1097 = vmatmul.mubr.bf16.gmra.mxu1 %v1215_v23 }
 0x11f   : > { %v1070_v26 = vpop.f32.mrf.mxu0  ;;  %v1677_v34 = vpop.f32.mrf.mxu1 }
 0x120   : > { %v1667_v27 = vadd.f32 %v1070_v26, %v1664_v25 }
 0x121   : > { %v459_v28 = vpop.f32.mrf.mxu0  ;;  %v1684_v40 = vpop.f32.mrf.mxu1 }
 0x122   : > { %v1670_v29 = vadd.f32 %v1664_v25, %v459_v28  ;;  %v994_v31 = vmul.f32 -1.442695, %v1667_v27 }
 0x123   : > { %v1071_v30 = vpop.f32.mrf.mxu0  ;;  %v1690_v45 = vpop.f32.mrf.mxu1 }
 0x124   : > { %v992_v32 = vmul.f32 -1.442695, %v1670_v29  ;;  %v1675_v33 = vadd.f32 %v1071_v30, %v1664_v25 }
 0x125   : > { %v462_v35 = vpop.f32.mrf.mxu0  ;;  %v1699_v51 = vpop.f32.mrf.mxu1 }
 0x126   : > { %1216 = vpow2.f32 %v992_v32  ;;  %v1680_v36 = vadd.f32 %v1664_v25, %v462_v35  ;;  %v995_v38 = vmul.f32 -1.442695, %v1675_v33 }
 0x127   : > { %v1074_v37 = vpop.f32.mrf.mxu0  ;;  %1218 = vpow2.f32 %v994_v31  ;;  %v1705_v59 = vpop.f32.mrf.mxu1 }
 0x128   : > { %v993_v39 = vmul.f32 -1.442695, %v1680_v36  ;;  %v1696_v48 = vadd.f32 %v1074_v37, %v1664_v25 }
 0x129   : > { %v475_v41 = vpop.f32.mrf.mxu0  ;;  %v1708_v2 = vpop.f32.mrf.mxu1 }
 0x12a   : > { %1220 = vpow2.f32 %v993_v39  ;;  %v1687_v42 = vadd.f32 %v1664_v25, %v475_v41  ;;  %v998_v54 = vmul.f32 -1.442695, %v1696_v48  ;;  %v1743_v41 = vadd.f32 %v1664_v25, %v1684_v40 }
 0x12b   : > { %v1075_v43 = vpop.f32.mrf.mxu0  ;;  %1222 = vpow2.f32 %v995_v38  ;;  %v1710_v6 = vpop.f32.mrf.mxu1 }
 0x12c   : > { %v996_v44 = vmul.f32 -1.442695, %v1687_v42  ;;  %v1703_v55 = vadd.f32 %v1075_v43, %v1664_v25 }
 0x12d   : > { %v478_v46 = vpop.f32.mrf.mxu0  ;;  %v542_v14 = vpop.f32.mrf.mxu1 }
 0x12e   : > { %v1693_v47 = vadd.f32 %v1664_v25, %v478_v46  ;;  %1224 = vpow2.f32 %v996_v44  ;;  %v999_v61 = vmul.f32 -1.442695, %v1703_v55 }
 0x12f   : > { %v1078_v49 = vpop.f32.mrf.mxu0  ;;  %v1727_v22 = vpop.f32.mrf.mxu1 }
 0x130   : > { %v997_v50 = vmul.f32 -1.442695, %v1693_v47  ;;  %v1713_v7 = vadd.f32 %v1078_v49, %v1664_v25 }
 0x131   : > { %v491_v52 = vpop.f32.mrf.mxu0  ;;  %v555_v43 = vpop.f32.mrf.mxu1 }
 0x132   : > { %1226 = vpow2.f32 %v997_v50  ;;  %v1716_v8 = vadd.f32 %v1664_v25, %v491_v52  ;;  %v1002_v15 = vmul.f32 -1.442695, %v1713_v7 }
 0x133   : > { %v1217_v53 = vpop.eup %1216  ;;  %v1079_v56 = vpop.f32.mrf.mxu0  ;;  %1228 = vpow2.f32 %v998_v54  ;;  %v1758_v54 = vadd.f32 %v1677_v34, %v1664_v25 }
 0x134   : > { %v682_v57 = vadd.f32 1.0, %v1217_v53  ;;  %v1219_v58 = vpop.eup %1218  ;;  %v1719_v13 = vadd.f32 %v1079_v56, %v1664_v25  ;;  %v1000_v16 = vmul.f32 -1.442695, %v1716_v8  ;;  %v1008_v56 = vmul.f32 -1.442695, %v1743_v41 }
 0x135   : > { %v494_v62 = vpop.f32.mrf.mxu0  ;;  %v684_v63 = vadd.f32 1.0, %v1219_v58 }
 0x136   : > { %1230 = vrcp.f32 %v682_v57  ;;  %v1724_v17 = vadd.f32 %v1664_v25, %v494_v62  ;;  %v1003_v20 = vmul.f32 -1.442695, %v1719_v13  ;;  %v1761_v57 = vpop.f32.mrf.mxu1  ;;  %v1772_v62 = vadd.f32 %v1664_v25, %v1708_v2 }
 0x137   : > { %v1221_v60 = vpop.eup %1220  ;;  %v1082_v3 = vpop.f32.mrf.mxu0 }
 0x138   : > { %v683_v0 = vadd.f32 1.0, %v1221_v60  ;;  %v1223_v1 = vpop.eup %1222  ;;  %v1730_v23 = vadd.f32 %v1082_v3, %v1664_v25  ;;  %v1001_v24 = vmul.f32 -1.442695, %v1724_v17  ;;  %v1012_v2 = vmul.f32 -1.442695, %v1772_v62 }
 0x139   : > { %v685_v5 = vadd.f32 1.0, %v1223_v1  ;;  %v507_v11 = vpop.f32.mrf.mxu0  ;;  %v558_v1 = vpop.f32.mrf.mxu1 }
 0x13a   : > { %1232 = vrcp.f32 %v683_v0  ;;  %v1734_v26 = vadd.f32 %v1664_v25, %v507_v11  ;;  %v1006_v44 = vmul.f32 -1.442695, %v1730_v23  ;;  %v1010_v0 = vmul.f32 -1.442695, %v1758_v54 }
 0x13b   : > { %1234 = vpow2.f32 %v999_v61  ;;  %v1225_v4 = vpop.eup %1224  ;;  %v1083_v18 = vpop.f32.mrf.mxu0 }
 0x13c   : > { %1236 = vrcp.f32 %v684_v63  ;;  %v686_v10 = vadd.f32 1.0, %v1225_v4  ;;  %v1739_v38 = vadd.f32 %v1083_v18, %v1664_v25  ;;  %v1004_v49 = vmul.f32 -1.442695, %v1734_v26 }
 0x13d   : > { %1238 = vrcp.f32 %v685_v5  ;;  %v510_v31 = vpop.f32.mrf.mxu0 }
 0x13e   : > { %1240 = vrcp.f32 %v686_v10  ;;  %v1007_v40 = vmul.f32 -1.442695, %v1739_v38 }
 0x13f   : > { %v1227_v9 = vpop.eup %1226 }
 0x140   : > { %v687_v12 = vadd.f32 1.0, %v1227_v9  ;;  %v1229_v19 = vpop.eup %1228  ;;  %v1777_v9 = vadd.f32 %v1664_v25, %v542_v14 }
 0x141   : > { %v688_v30 = vadd.f32 1.0, %v1229_v19 }
 0x142   : > { %1242 = vrcp.f32 %v687_v12  ;;  %v1783_v12 = vadd.f32 %v1705_v59, %v1664_v25 }
 0x143   : > { %v1231_v21 = vpop.eup %1230  ;;  %1244 = vpow2.f32 %v1002_v15 }
 0x144   : > { %1246 = vpow2.f32 %v1000_v16  ;;  %v778_v35 = vmul.f32 %v1231_v21, %v1670_v29  ;;  %v1748_v29 = vadd.f32 %v1664_v25, %v510_v31  ;;  %v1785_v16 = vpop.f32.mrf.mxu1  ;;  %v1794_v21 = vadd.f32 %v1664_v25, %v555_v43 }
 0x145   : > { %1248 = vpow2.f32 %v1003_v20  ;;  %v1013_v20 = vmul.f32 -1.442695, %v1777_v9 }
 0x146   : > { %1250 = vpow2.f32 %v1001_v24 }
 0x147   : > { %v1233_v28 = vpop.eup %1232  ;;  %1252 = vrcp.f32 %v688_v30  ;;  %v1014_v30 = vmul.f32 -1.442695, %v1783_v12 }
 0x148   : > { %v1235_v32 = vpop.eup %1234  ;;  %v779_v37 = vmul.f32 %v1233_v28, %v1680_v36  ;;  %v1752_v36 = vadd.f32 %v1664_v25, %v1699_v51  ;;  %1254 = vpow2.f32 %v1006_v44  ;;  %v1005_v51 = vmul.f32 -1.442695, %v1748_v29 }
 0x149   : > { %v1237_v39 = vpop.eup %1236  ;;  %v689_v50 = vadd.f32 1.0, %v1235_v32  ;;  %1256 = vpow2.f32 %v1004_v49  ;;  %v1016_v44 = vmul.f32 -1.442695, %v1794_v21 }
 0x14a   : > { %v811_v46 = vadd.f32 %v779_v37, %v778_v35  ;;  %v780_v52 = vmul.f32 %v1237_v39, %v1667_v27  ;;  %v1239_v53 = vpop.eup %1238  ;;  %v1766_v27 = vadd.f32 %v1690_v45, %v1664_v25  ;;  %v1009_v60 = vmul.f32 -1.442695, %v1752_v36 }
 0x14b   : > { %1258 = vrcp.f32 %v689_v50  ;;  %v1241_v61 = vpop.eup %1240  ;;  %v781_v34 = vmul.f32 %v1239_v53, %v1675_v33  ;;  %v1799_v37 = vadd.f32 %v1664_v25, %v558_v1 }
 0x14c   : > { %v812_v58 = vadd.f32 %v811_v46, %v780_v52  ;;  %1260 = vpow2.f32 %v1007_v40  ;;  %v1011_v5 = vmul.f32 -1.442695, %v1766_v27  ;;  %v782_v33 = vmul.f32 %v1241_v61, %v1687_v42 }
 0x14d   : > { %1262 = vpow2.f32 %v1008_v56  ;;  %v1790_v42 = vadd.f32 %v1710_v6, %v1664_v25  ;;  %v1805_v56 = vadd.f32 %v1727_v22, %v1664_v25 }
 0x14e   : > { %v813_v4 = vadd.f32 %v812_v58, %v781_v34  ;;  %1264 = vpow2.f32 %v1005_v51  ;;  %v1017_v51 = vmul.f32 -1.442695, %v1799_v37 }
 0x14f   : > { %v1243_v63 = vpop.eup %1242  ;;  %1266 = vpow2.f32 %v1009_v60  ;;  %v1015_v6 = vmul.f32 -1.442695, %v1790_v42 }
 0x150   : > { %v1245_v3 = vpop.eup %1244  ;;  %1268 = vpow2.f32 %v1010_v0  ;;  %v814_v18 = vadd.f32 %v813_v4, %v782_v33  ;;  %v783_v19 = vmul.f32 %v1243_v63, %v1693_v47  ;;  %v571_v47 = vpop.f32.mrf.mxu1 }
 0x151   : > { %v1247_v45 = vpop.eup %1246  ;;  %v692_v15 = vadd.f32 1.0, %v1245_v3  ;;  %v1018_v3 = vmul.f32 -1.442695, %v1805_v56 }
 0x152   : > { %v690_v10 = vadd.f32 1.0, %v1247_v45  ;;  %v1249_v11 = vpop.eup %1248  ;;  %v815_v32 = vadd.f32 %v814_v18, %v783_v19  ;;  %v1099_v52 = vpop.f32.mrf.mxu1  ;;  %v1815_v45 = vadd.f32 %v1664_v25, %v571_v47 }
 0x153   : > { %v1251_v14 = vpop.eup %1250  ;;  %v693_v59 = vadd.f32 1.0, %v1249_v11 }
 0x154   : > { %1270 = vrcp.f32 %v690_v10  ;;  %v691_v24 = vadd.f32 1.0, %v1251_v14  ;;  %v1253_v28 = vpop.eup %1252  ;;  %v574_v1 = vpop.f32.mrf.mxu1  ;;  %v1824_v14 = vadd.f32 %v1785_v16, %v1664_v25 }
 0x155   : > { %1272 = vpow2.f32 %v1011_v5  ;;  %v1255_v31 = vpop.eup %1254  ;;  %v784_v43 = vmul.f32 %v1253_v28, %v1696_v48  ;;  %v1809_v48 = vadd.f32 %v1761_v57, %v1664_v25  ;;  %v1820_v10 = vadd.f32 %v1664_v25, %v574_v1 }
 0x156   : > { %1274 = vpow2.f32 %v1012_v2  ;;  %v1257_v35 = vpop.eup %1256  ;;  %v696_v50 = vadd.f32 1.0, %v1255_v31 }
 0x157   : > { %1276 = vrcp.f32 %v692_v15  ;;  %v694_v46 = vadd.f32 1.0, %v1257_v35  ;;  %v816_v53 = vadd.f32 %v815_v32, %v784_v43  ;;  %v1019_v2 = vmul.f32 -1.442695, %v1809_v48 }
 0x158   : > { %1278 = vrcp.f32 %v691_v24  ;;  %v1259_v39 = vpop.eup %1258  ;;  %v1021_v47 = vmul.f32 -1.442695, %v1820_v10 }
 0x159   : > { %1280 = vpow2.f32 %v1013_v20  ;;  %v1261_v49 = vpop.eup %1260  ;;  %v785_v61 = vmul.f32 %v1259_v39, %v1703_v55  ;;  %v1020_v20 = vmul.f32 -1.442695, %v1815_v45  ;;  %v1022_v39 = vmul.f32 -1.442695, %v1824_v14 }
 0x15a   : > { %1282 = vrcp.f32 %v693_v59  ;;  %v1263_v40 = vpop.eup %1262  ;;  %v697_v34 = vadd.f32 1.0, %v1261_v49 }
 0x15b   : > { %1284 = vpow2.f32 %v1014_v30  ;;  %v1265_v58 = vpop.eup %1264  ;;  %v698_v0 = vadd.f32 1.0, %v1263_v40  ;;  %v817_v4 = vadd.f32 %v816_v53, %v785_v61  ;;  %v1829_v30 = vadd.f32 %v1099_v52, %v1664_v25 }
 0x15c   : > { %1286 = vrcp.f32 %v694_v46  ;;  %v1267_v60 = vpop.eup %1266  ;;  %v695_v63 = vadd.f32 1.0, %v1265_v58 }
 0x15d   : > { %1288 = vpow2.f32 %v1015_v6  ;;  %v1269_v22 = vpop.eup %1268  ;;  %v699_v5 = vadd.f32 1.0, %v1267_v60  ;;  %v1023_v49 = vmul.f32 -1.442695, %v1829_v30 }
 0x15e   : > { %1290 = vpow2.f32 %v1016_v44  ;;  %v700_v15 = vadd.f32 1.0, %v1269_v22 }
 0x15f   : > { %1292 = vrcp.f32 %v696_v50 }
 0x160   : > { %1294 = vrcp.f32 %v695_v63 }
 0x161   : > { %v1271_v57 = vpop.eup %1270  ;;  %1296 = vpow2.f32 %v1017_v51 }
 0x162   : > { %v1273_v33 = vpop.eup %1272  ;;  %v786_v55 = vmul.f32 %v1271_v57, %v1716_v8  ;;  %1298 = vrcp.f32 %v697_v34 }
 0x163   : > { %v1275_v11 = vpop.eup %1274  ;;  %1300 = vrcp.f32 %v698_v0  ;;  %v701_v8 = vadd.f32 1.0, %v1273_v33 }
 0x164   : > { %v1277_v18 = vpop.eup %1276  ;;  %1302 = vpow2.f32 %v1018_v3  ;;  %v818_v19 = vadd.f32 %v817_v4, %v786_v55  ;;  %v702_v32 = vadd.f32 1.0, %v1275_v11 }
 0x165   : > { %v1279_v59 = vpop.eup %1278  ;;  %1304 = vrcp.f32 %v699_v5  ;;  %v788_v16 = vmul.f32 %v1277_v18, %v1713_v7 }
 0x166   : > { %v1281_v24 = vpop.eup %1280  ;;  %1306 = vpow2.f32 %v1019_v2  ;;  %v787_v28 = vmul.f32 %v1279_v59, %v1724_v17 }
 0x167   : > { %v1283_v31 = vpop.eup %1282  ;;  %1308 = vrcp.f32 %v700_v15  ;;  %v703_v44 = vadd.f32 1.0, %v1281_v24 }
 0x168   : > { %v1285_v35 = vpop.eup %1284  ;;  %v819_v6 = vadd.f32 %v818_v19, %v787_v28  ;;  %1310 = vpow2.f32 %v1020_v20  ;;  %v789_v17 = vmul.f32 %v1283_v31, %v1719_v13 }
 0x169   : > { %v1287_v43 = vpop.eup %1286  ;;  %1312 = vrcp.f32 %v701_v8  ;;  %v704_v40 = vadd.f32 1.0, %v1285_v35 }
 0x16a   : > { %v1289_v46 = vpop.eup %1288  ;;  %v820_v25 = vadd.f32 %v819_v6, %v788_v16  ;;  %1314 = vpow2.f32 %v1021_v47  ;;  %v790_v7 = vmul.f32 %v1287_v43, %v1734_v26 }
 0x16b   : > { %v1291_v50 = vpop.eup %1290  ;;  %1316 = vrcp.f32 %v702_v32  ;;  %v705_v60 = vadd.f32 1.0, %v1289_v46 }
 0x16c   : > { %v1293_v52 = vpop.eup %1292  ;;  %1318 = vpow2.f32 %v1022_v39  ;;  %v821_v53 = vadd.f32 %v820_v25, %v789_v17  ;;  %v706_v0 = vadd.f32 1.0, %v1291_v50 }
 0x16d   : > { %v1295_v58 = vpop.eup %1294  ;;  %1320 = vrcp.f32 %v703_v44  ;;  %v792_v1 = vmul.f32 %v1293_v52, %v1730_v23 }
 0x16e   : > { %v1297_v51 = vpop.eup %1296  ;;  %v822_v61 = vadd.f32 %v821_v53, %v790_v7  ;;  %1322 = vpow2.f32 %v1023_v49  ;;  %v791_v13 = vmul.f32 %v1295_v58, %v1748_v29 }
 0x16f   : > { %v1299_v34 = vpop.eup %1298  ;;  %1324 = vrcp.f32 %v704_v40  ;;  %v707_v26 = vadd.f32 1.0, %v1297_v51 }
 0x170   : > { %v1301_v63 = vpop.eup %1300  ;;  %v823_v22 = vadd.f32 %v822_v61, %v791_v13  ;;  %1326 = vrcp.f32 %v705_v60  ;;  %v793_v57 = vmul.f32 %v1299_v34, %v1739_v38 }
 0x171   : > { %v1303_v3 = vpop.eup %1302  ;;  %v794_v2 = vmul.f32 %v1301_v63, %v1743_v41  ;;  %1328 = vrcp.f32 %v706_v0 }
 0x172   : > { %v1305_v4 = vpop.eup %1304  ;;  %v824_v5 = vadd.f32 %v823_v22, %v792_v1  ;;  %v708_v11 = vadd.f32 1.0, %v1303_v3  ;;  %1330 = vrcp.f32 %v707_v26 }
 0x173   : > { %v1307_v33 = vpop.eup %1306  ;;  %v795_v19 = vmul.f32 %v1305_v4, %v1752_v36 }
 0x174   : > { %v1309_v55 = vpop.eup %1308  ;;  %v825_v29 = vadd.f32 %v824_v5, %v793_v57  ;;  %v709_v23 = vadd.f32 1.0, %v1307_v33  ;;  %1332 = vrcp.f32 %v708_v11 }
 0x175   : > { %v1311_v15 = vpop.eup %1310  ;;  %v796_v24 = vmul.f32 %v1309_v55, %v1758_v54 }
 0x176   : > { %v1313_v18 = vpop.eup %1312  ;;  %v826_v20 = vadd.f32 %v825_v29, %v794_v2  ;;  %v710_v38 = vadd.f32 1.0, %v1311_v15  ;;  %1334 = vrcp.f32 %v709_v23  ;;  %v810_v2 = vld [vmem:[#allocation2] sm:$0x1] }
 0x177   : > { %v1315_v59 = vpop.eup %1314  ;;  %v797_v41 = vmul.f32 %v1313_v18, %v1766_v27 }
 0x178   : > { %v1317_v8 = vpop.eup %1316  ;;  %v827_v28 = vadd.f32 %v826_v20, %v795_v19  ;;  %v711_v35 = vadd.f32 1.0, %v1315_v59  ;;  %1336 = vrcp.f32 %v710_v38 }
 0x179   : > { %v1319_v47 = vpop.eup %1318  ;;  %v798_v36 = vmul.f32 %v1317_v8, %v1772_v62 }
 0x17a   : > { %v1321_v31 = vpop.eup %1320  ;;  %v828_v32 = vadd.f32 %v827_v28, %v796_v24  ;;  %v712_v6 = vadd.f32 1.0, %v1319_v47  ;;  %1338 = vrcp.f32 %v711_v35 }
 0x17b   : > { %v1323_v16 = vpop.eup %1322  ;;  %v799_v44 = vmul.f32 %v1321_v31, %v1777_v9 }
 0x17c   : > { %v829_v39 = vadd.f32 %v828_v32, %v797_v41  ;;  %v1325_v43 = vpop.eup %1324  ;;  %v713_v54 = vadd.f32 1.0, %v1323_v16  ;;  %1340 = vrcp.f32 %v712_v6 }
 0x17d   : > { %v1327_v17 = vpop.eup %1326  ;;  %v800_v25 = vmul.f32 %v1325_v43, %v1783_v12 }
 0x17e   : > { %v830_v46 = vadd.f32 %v829_v39, %v798_v36  ;;  %v1329_v49 = vpop.eup %1328  ;;  %v801_v50 = vmul.f32 %v1327_v17, %v1790_v42  ;;  %1342 = vrcp.f32 %v713_v54 }
 0x17f   : > { %v1331_v62 = vpop.eup %1330  ;;  %v802_v40 = vmul.f32 %v1329_v49, %v1794_v21 }
 0x180   : > { %v831_v27 = vadd.f32 %v830_v46, %v799_v44  ;;  %v803_v9 = vmul.f32 %v1331_v62, %v1799_v37 }
 0x181   : > { %v1333_v53 = vpop.eup %1332 }
 0x182   : > { %v832_v52 = vadd.f32 %v831_v27, %v800_v25  ;;  %v804_v60 = vmul.f32 %v1333_v53, %v1805_v56 }
 0x183   : > { %v1335_v51 = vpop.eup %1334 }
 0x184   : > { %v833_v7 = vadd.f32 %v832_v52, %v801_v50  ;;  %v805_v13 = vmul.f32 %v1335_v51, %v1809_v48 }
 0x185   : > { %v1337_v12 = vpop.eup %1336 }
 0x186   : > { %v834_v58 = vadd.f32 %v833_v7, %v802_v40  ;;  %v806_v42 = vmul.f32 %v1337_v12, %v1815_v45 }
 0x187   : > { %v1339_v63 = vpop.eup %1338 }
 0x188   : > { %v835_v61 = vadd.f32 %v834_v58, %v803_v9  ;;  %v807_v21 = vmul.f32 %v1339_v63, %v1820_v10 }
 0x189   : > { %v1341_v1 = vpop.eup %1340 }
 0x18a   : > { %v836_v34 = vadd.f32 %v835_v61, %v804_v60  ;;  %v808_v37 = vmul.f32 %v1341_v1, %v1824_v14 }
 0x18b   : > { %v1343_v3 = vpop.eup %1342 }
 0x18c   : > { %v837_v0 = vadd.f32 %v836_v34, %v805_v13  ;;  %v809_v56 = vmul.f32 %v1343_v3, %v1829_v30 }
 0x18e   : > { %v838_v22 = vadd.f32 %v837_v0, %v806_v42 }
 0x190   : > { %v839_v4 = vadd.f32 %v838_v22, %v807_v21 }
 0x192   : > { %v840_v26 = vadd.f32 %v839_v4, %v808_v37 }
 0x194   : > { %v841_v57 = vadd.f32 %v840_v26, %v809_v56 }
 0x196   : > { %v842_v48 = vrot.slane %v841_v57, 4 }
 0x198   : > { %v843_v5 = vadd.f32 %v842_v48, %v841_v57 }
 0x19a   : > { %v844_v33 = vrot.slane %v843_v5, 2 }
 0x19c   : > { %v845_v45 = vadd.f32 %v844_v33, %v843_v5 }
 0x19e   : > { %v846_v55 = vrot.slane %v845_v45, 1 }
 0x1a0   : > { %v847_v10 = vadd.f32 %v846_v55, %v845_v45 }
 0x1a2   : > { %v848_v11 = vadd.f32 %v847_v10, %v810_v2 }
 0x1a4   : > { %849 = vst [vmem:[#allocation2] sm:$0x1] %v848_v11 }
 0x1ab   : > { %v853_v14 = vld [vmem:[#allocation2] sm:$0x1] }
 0x1ac   : > { %v854_v29 = vmul.f32 0.00390625, %v853_v14 }
 0x1ae   : > { %855 = vst [vmem:[%s218_s30] sm:$0x1] %v854_v29 }
 0x1af   : > { %1411 = shalt.err (!%p1408_p5)
}
 0x1b0   : > { %s1412_s18 = scalar_lea.hbm %s867_s21, 16  ;;  %s1416_s26 = scalar_lea.hbm %s1900_s3, 32 }
 0x1b1   : > { %p1413_p7 = scmp.ne.s32.totalorder %s867_s21, %s1412_s18  ;;  %p1417_p9 = scmp.lt.s32.totalorder %s867_s21, %s1900_s3 }
 0x1b2   : > { %p1418_p11 = scmp.lt.s32.totalorder %s1416_s26, %s1412_s18 }
 0x1b3   : > { %p1414_p4 = pnand %p1413_p7, %p1600_p13 }
 0x1b4   : > { %p1419_p10 = por %p1418_p11, %p1417_p9 }
 0x1b5   : > { %p1415_p6 = pneg %p1414_p4 }
 0x1b7   : > { %p1420_p1 = pnand %p1419_p10, %p1415_p6 }
 0x1b9   : > { %1423 = shalt.err (!%p1420_p1)
}
 0x1ba   : > { %1122 = dma.vmem_to_hbm [thread:$0]  (%p1600_p13), %s870_s29, 16, %s867_s21, %s857_s10  }
 0x1bb PF: > { %s881_s22 = sand.u32 1, %s1462_s12   ;;  %p1916_p8 = scmp.ne.s32.totalorder %s1907_s23, 0 }
 0x1bc   : > { %p1917_p12 = scmp.ge.s32.totalorder %s1482_s17, 2  ;;  %s882_s24 = scalar_lea.sflag [#allocation5], %s881_s22 }
 0x1be   : > { %p1133_p0 = pnand %p1917_p12, %p1916_p8 }
 0x1c0   : > { %p1134_p2 = pneg %p1133_p0 }
 0x1c2   : > { %1457 = dma.done.wait (%p1134_p2), %s882_s24, 16  }
 0x1c3   : > { %1459 = vsyncadd (%p1134_p2), %s882_s24, 4294967280  ;;  %s20_s17 = sadd.s32 1, %s1482_s17   ;;  %s1918_s12 = smov %s1466_s13 }
 0x1c4   : > { %p17_p3 = scmp.ge.s32.totalorder %s20_s17, 4   ;;  %s1919_s13 = smov %s1470_s14 }
 0x1c5   : > { %s1920_s14 = smov %s1609_s19  ;;  %s1921_s15 = smov %s1478_s16 }
 0x1c6   : > { %s1922_s16 = smov %s1924_s28  ;;  %19 = sbr.rel (!%p17_p3) target bundleno = 7 (0x7), region = 89 }
 0x1cb   :  { %886 = vsyncpa [#allocation4], 1 }
 0x1cc   :  { %888 = vsyncpa [#allocation4 + $0x1], 1 }
 0x1cd   :  { %889 = vsyncpa [#allocation7], 1 }
 0x1ce   :  { %890 = vsyncpa [#allocation5], 1 }
 0x1cf   :  { %892 = vsyncpa [#allocation5 + $0x1], 1 }

</bundles_post_ra>
